<compile_context>
chip_gen: v5e
topology: v5e:2x2
jax: 0.10.0
libtpu: 0.0.40
codegen_flags: <defaults>
</compile_context>

<pallas_src>
import jax
import jax.numpy as jnp
from jax.experimental import pallas as pl
from jax.experimental.pallas import tpu as pltpu

_LANE = 128
# <= 4 MiB per block: 2 input + 2 output double-buffers stay comfortably under
# the 32 MiB scoped-VMEM default (and well under v7x's 64 MiB physical VMEM),
# while being large enough to sit at ~85%+ of the HBM roofline on v5e/v6e/v7x.
_TARGET_BLOCK_BYTES = 4 * 1024 * 1024


def _identity_kernel(x_ref, o_ref):
    # The entire "forward" of Identity: pass the tile through unchanged.
    o_ref[...] = x_ref[...]


def _sublane_min(dtype) -> int:
    # Packed-dtype sublane minimums: f32 -> 8, bf16 -> 16, int8/fp8 -> 32.
    itemsize = jnp.dtype(dtype).itemsize
    return max(8, 32 // max(itemsize, 1))


def _pick_tile_rows(rows: int, cols: int, itemsize: int, sub: int) -> int:
    """Largest row count <= ~4 MiB/block, multiple of the sublane minimum.

    Prefer an exact divisor of `rows` so every grid step moves a full,
    unmasked lane-dense tile (no masked vst/vld on a ragged last block).
    """
    max_rows = max(sub, (_TARGET_BLOCK_BYTES // (cols * itemsize)) // sub * sub)
    if rows <= max_rows:
        return rows
    # Search downward (in sublane-sized steps) for an exact divisor.
    cand = max_rows
    while cand >= sub:
        if rows % cand == 0:
            return cand
        cand -= sub
    # No divisor found: fall back to max_rows; pl.cdiv + Pallas block masking
    # keeps the ragged final tile correct.
    return max_rows


def identity(x: jax.Array) -> jax.Array:
    """Pallas implementation of `Identity.forward`: returns input unchanged."""
    n = x.size
    dtype = x.dtype
    itemsize = jnp.dtype(dtype).itemsize
    sub = _sublane_min(dtype)

    # Fast path: Identity is semantically a no-op.  Empty, tiny, or awkwardly
    # sized tensors are returned directly -- no pad/concat or slice copies.
    if n == 0 or n % (sub * _LANE) != 0:
        return x

    # Widen the slab: pick the largest lane-dense column count that tiles the
    # flat tensor exactly (no padding), with rows a multiple of the sublane
    # minimum so the BlockSpec satisfies the (8,128)/packed tiling constraint.
    # Wide, unmasked lane-dense stores are the biggest single lever on TPU.
    cols = _LANE
    for cand in (8192, 4096, 2048, 1024, 512, 256):
        if n % cand == 0 and (n // cand) % sub == 0:
            cols = cand
            break
    rows = n // cols
    tile_rows = _pick_tile_rows(rows, cols, itemsize, sub)

    slab = x.reshape(rows, cols)  # contiguous reshape: layout-only, no HBM copy
    grid = (pl.cdiv(rows, tile_rows),)

    out = pl.pallas_call(
        _identity_kernel,
        out_shape=jax.ShapeDtypeStruct((rows, cols), dtype),
        grid_spec=pltpu.PrefetchScalarGridSpec(
            num_scalar_prefetch=0,
            grid=grid,
            in_specs=[pl.BlockSpec((tile_rows, cols), lambda i: (i, 0))],
            out_specs=pl.BlockSpec((tile_rows, cols), lambda i: (i, 0)),
        ),
        # Output buffer aliases the input buffer: when the caller can donate,
        # XLA needs no separate result allocation (and the copy is value-safe
        # even if aliasing is realized, since the kernel writes identical data).
        input_output_aliases={0: 0},
        cost_estimate=pl.CostEstimate(
            flops=0, transcendentals=0, bytes_accessed=2 * n * itemsize),
        compiler_params=pltpu.CompilerParams(
            # Single grid axis is parallel so both v7x TensorCores can drive
            # DMA concurrently; no-op on single-core v5e/v6e.
            dimension_semantics=("parallel",),
        ),
    )(slab)

    return out.reshape(x.shape)


if __name__ == "__main__":
    key = jax.random.PRNGKey(0)

    # NCHW input consistent with the EfficientNet usage: batch=2, channels=4,
    # spatial=16x16.  2048 f32 elements tile cleanly, so this exercises the
    # Pallas kernel path.
    x = jax.random.normal(key, (2, 4, 16, 16), dtype=jnp.float32)
    y = identity(x)
    jax.block_until_ready(y)
    assert y.shape == x.shape, (y.shape, x.shape)
    assert y.dtype == x.dtype, (y.dtype, x.dtype)
    assert jnp.array_equal(y, x), "Identity kernel did not return input unchanged"

    # bf16 input (packed dtype, sublane-min 16) also goes through the kernel.
    xb = jax.random.normal(jax.random.PRNGKey(0), (2, 4, 16, 16), dtype=jnp.bfloat16)
    yb = identity(xb)
    jax.block_until_ready(yb)
    assert yb.dtype == xb.dtype and jnp.array_equal(yb, xb), "bf16 Identity mismatch"

    # Awkward size exercises the pure pass-through fast path (still Identity).
    x2 = jax.random.normal(jax.random.PRNGKey(0), (3, 5, 7), dtype=jnp.float32)
    y2 = identity(x2)
    jax.block_until_ready(y2)
    assert jnp.array_equal(y2, x2), "Identity fast path did not return input unchanged"

    print("KERNEL_OK")
</pallas_src>

<mosaic_0001>
module attributes {stable_mosaic.version = 11 : i64} {
  func.func @_identity_kernel(%arg0: i32, %arg1: memref<8x256xf32, #tpu.memory_space<vmem>>, %arg2: memref<8x256xf32, #tpu.memory_space<vmem>>) attributes {dimension_semantics = [#tpu.dimension_semantics<parallel>], iteration_bounds = array<i64: 1>, scalar_prefetch = 0 : i64, scratch_operands = 0 : i64, tpu.core_type = #tpu.core_type<tc>, window_params = [{transform_indices = @transform_0, window_bounds = array<i64: 8, 256>}, {transform_indices = @transform_1, window_bounds = array<i64: 8, 256>}]} {
    %c0 = arith.constant 0 : index
    %c0_0 = arith.constant 0 : index
    %0 = vector.load %arg1[%c0, %c0_0] : memref<8x256xf32, #tpu.memory_space<vmem>>, vector<8x256xf32>
    %c0_1 = arith.constant 0 : index
    %c0_2 = arith.constant 0 : index
    %1 = vector.load %arg2[%c0_1, %c0_2] : memref<8x256xf32, #tpu.memory_space<vmem>>, vector<8x256xf32>
    tpu.vector_store %arg2[%c0_1, %c0_2], %0 {strides = array<i32>} : memref<8x256xf32, #tpu.memory_space<vmem>>, vector<8x256xf32>,
    return
  }
  func.func @transform_0(%arg0: i32) -> (i32, i32) {
    %c0_i32 = arith.constant 0 : i32
    %c0_i32_0 = arith.constant 0 : i32
    return %arg0, %c0_i32 : i32, i32
  }
  func.func @transform_1(%arg0: i32) -> (i32, i32) {
    %c0_i32 = arith.constant 0 : i32
    %c0_i32_0 = arith.constant 0 : i32
    return %arg0, %c0_i32 : i32, i32
  }
}

</mosaic_0001>

<bundles_post_ra>
// kernel: tpu_custom_call.1
= control target key start
LH: loop header
LB: loop body
LE: loop exit
PB: predicated region body
PF: predicated region fallthrough
CT: control target
= control target key end

     0   :  { %6 = vsyncpa [#allocation3], 0  ;;  %s116_s0 = inlined_call_operand.hbm [shape: f32[8,256], index: 0, kind: input, shape index: {}, may-alias: {0,1}]   ;;  %s117_s1 = inlined_call_operand.hbm [shape: f32[8,256], index: 1, kind: output, shape index: {}, may-alias: {0,1}]  }
   0x1   :  { %7 = vsyncpa [#allocation4], 0  ;;  %s13_s8 = sshll.u32 %s116_s0, 4  ;;  %s98_s9 = smov [#allocation2]   ;;  %s14_s8 = int_to_ptr.hbm [resolvable:$true] %s13_s8 }
   0x2   :  { %s15_s10 = sshll.u32 %s98_s9, 4  ;;  %s16_s10 = int_to_ptr.vmem [resolvable:$true] %s15_s10 }
   0x3   :  { %18 = dma.hbm_to_vmem [thread:$0]  %s14_s8, 256, %s16_s10, [#allocation3]  }
   0x4   :  { %94 = dma.done.wait [#allocation3], 256  }
   0x5   :  { %95 = vsyncadd [#allocation3], 4294967040  ;;  %s99_s11 = smov [#allocation5]   ;;  %s34_s15 = sshll.u32 %s117_s1, 4  ;;  %v23_v0 = vld [vmem:[#allocation2] sm:$0xff]  ;;  %v24_v1 = vld [vmem:[#allocation2 + $0x8] sm:$0xff]  ;;  %s35_s15 = int_to_ptr.hbm [resolvable:$true] %s34_s15 }
   0x6   :  { %s32_s12 = sshll.u32 %s99_s11, 4  ;;  %25 = vst [vmem:[#allocation5] sm:$0xff] %v23_v0  ;;  %s33_s12 = int_to_ptr.vmem [resolvable:$true] %s32_s12 }
   0x7   :  { %26 = vst [vmem:[#allocation5 + $0x8] sm:$0xff] %v24_v1 }
   0x8   :  { %37 = dma.vmem_to_hbm [thread:$0]  %s33_s12, 256, %s35_s15, [#allocation4]  }
   0x9   :  { %96 = dma.done.wait [#allocation4], 256  }
   0xa   :  { %97 = vsyncadd [#allocation4], 4294967040 }
   0xb   :  { %42 = vsyncpa [#allocation3], 1 }
   0xc   :  { %43 = vsyncpa [#allocation4], 1 }

</bundles_post_ra>
